<compile_context>
chip_gen: v5e
topology: v5e:2x2
jax: 0.10.0
libtpu: 0.0.40
codegen_flags: <defaults>
</compile_context>

<pallas_src>
import functools

import numpy as np
import jax
import jax.numpy as jnp
from jax import lax
from jax.experimental import pallas as pl
from jax.experimental.pallas import tpu as pltpu

BN_EPS = 1e-5
KH = 3
KW = 3


# --------------------------------------------------------------------------
# Kernels
# --------------------------------------------------------------------------
def _conv_stats_kernel(x_ref, w_ref, y_ref, stats_ref, *, ow):
    """Pass 1a: 3x3 valid conv (one output row per step) + BN sum/sumsq."""
    # x_ref:     (1, H, W, Cin)      bf16, whole image, resident across row axis
    # w_ref:     (KH*KW*Cin, Cout)   bf16, im2col weight layout (ci fastest)
    # y_ref:     (1, 1, OW, Cout)    f32, raw conv output row (no bias, pre-BN)
    # stats_ref: (2, Cout)           f32, [sum; sum_sq], grid-resident accumulator
    oh = pl.program_id(1)
    rows = x_ref[0, pl.ds(oh, KH), :, :]                      # (KH, W, Cin)
    # In-register im2col for one output row: (OW, KH*KW*Cin), ci fastest.
    patches = jnp.concatenate(
        [rows[di][dj:dj + ow, :] for di in range(KH) for dj in range(KW)],
        axis=1)
    y = jnp.dot(patches, w_ref[...],
                preferred_element_type=jnp.float32)           # (OW, Cout) f32
    y_ref[0, 0, :, :] = y

    @pl.when((pl.program_id(0) == 0) & (oh == 0))
    def _init():
        stats_ref[...] = jnp.zeros_like(stats_ref)

    stats_ref[...] += jnp.concatenate(
        [jnp.sum(y, axis=0, keepdims=True),
         jnp.sum(y * y, axis=0, keepdims=True)], axis=0)


def _bn_relu_conv_stats_kernel(y1_ref, s1_ref, w_ref, y2_ref, stats_ref, *, ow):
    """Pass 1b + 2a fused: BN1 + ReLU applied in-register, then conv2 + stats."""
    # y1_ref:    (1, OH1, OW1, Cmid) f32, raw conv-1 output, resident per image
    # s1_ref:    (2, Cmid)           f32, [scale; shift] for stage-1 BN affine
    # w_ref:     (KH*KW*Cmid, Cout)  bf16
    # y2_ref:    (1, 1, OW2, Cout)   f32
    # stats_ref: (2, Cout)           f32, grid-resident accumulator
    oh = pl.program_id(1)
    slab = y1_ref[0, pl.ds(oh, KH), :, :]                     # (KH, OW1, Cmid) f32
    a = jnp.maximum(slab * s1_ref[0:1, :] + s1_ref[1:2, :], 0.0)   # BN+ReLU, f32
    a = a.astype(jnp.bfloat16)                                # bf16 MXU operand
    patches = jnp.concatenate(
        [a[di][dj:dj + ow, :] for di in range(KH) for dj in range(KW)],
        axis=1)
    y = jnp.dot(patches, w_ref[...],
                preferred_element_type=jnp.float32)           # (OW2, Cout) f32
    y2_ref[0, 0, :, :] = y

    @pl.when((pl.program_id(0) == 0) & (oh == 0))
    def _init():
        stats_ref[...] = jnp.zeros_like(stats_ref)

    stats_ref[...] += jnp.concatenate(
        [jnp.sum(y, axis=0, keepdims=True),
         jnp.sum(y * y, axis=0, keepdims=True)], axis=0)


def _bn_relu_kernel(y_ref, s_ref, o_ref):
    """Pass 2b: elementwise normalize + affine + ReLU (fully parallel)."""
    o_ref[...] = jnp.maximum(y_ref[...] * s_ref[0:1, :] + s_ref[1:2, :], 0.0)


# --------------------------------------------------------------------------
# Host-side glue
# --------------------------------------------------------------------------
def _im2col_weight(w_oihw):
    # (Cout, Cin, KH, KW) -> (KH, KW, Cin, Cout) -> (KH*KW*Cin, Cout); ci fastest,
    # matching the in-kernel patch concatenation order.
    cout, cin, kh, kw = w_oihw.shape
    return jnp.transpose(w_oihw, (2, 3, 1, 0)).reshape(kh * kw * cin, cout)


def _bn_scale_shift(stats, count, gamma, beta):
    # Fold training-mode BN into a per-channel scale/shift (tiny (C,) math).
    mean = stats[0] / count
    var = jnp.maximum(stats[1] / count - mean * mean, 0.0)    # biased variance
    scale = gamma * lax.rsqrt(var + BN_EPS)
    shift = beta - mean * scale
    return jnp.stack([scale, shift], axis=0).astype(jnp.float32)   # (2, C)


def across_forward(x_nchw, params):
    """Across.forward: NCHW in, NCHW out (training-mode BatchNorm)."""
    x = jnp.transpose(x_nchw, (0, 2, 3, 1)).astype(jnp.bfloat16)   # NHWC, bf16
    n, h, w, cin = x.shape
    cmid = params["w1"].shape[0]
    cout = params["w2"].shape[0]
    oh1, ow1 = h - KH + 1, w - KW + 1
    oh2, ow2 = oh1 - KH + 1, ow1 - KW + 1

    # Conv biases (params["b1"], params["b2"]) are intentionally NOT used in the
    # kernels: they cancel exactly under the training-mode BN that follows.
    w1 = _im2col_weight(params["w1"]).astype(jnp.bfloat16)    # (9*Cin, Cmid)
    w2 = _im2col_weight(params["w2"]).astype(jnp.bfloat16)    # (9*Cmid, Cout)

    # ---- pass 1a: conv1 + per-channel sum / sum-of-squares ------------------
    y1_raw, stats1 = pl.pallas_call(
        functools.partial(_conv_stats_kernel, ow=ow1),
        grid=(n, oh1),
        in_specs=[
            pl.BlockSpec((1, h, w, cin), lambda i, r: (i, 0, 0, 0)),
            pl.BlockSpec((KH * KW * cin, cmid), lambda i, r: (0, 0)),
        ],
        out_specs=[
            pl.BlockSpec((1, 1, ow1, cmid), lambda i, r: (i, r, 0, 0)),
            pl.BlockSpec((2, cmid), lambda i, r: (0, 0)),
        ],
        out_shape=[
            jax.ShapeDtypeStruct((n, oh1, ow1, cmid), jnp.float32),
            jax.ShapeDtypeStruct((2, cmid), jnp.float32),
        ],
        compiler_params=pltpu.CompilerParams(
            dimension_semantics=("arbitrary", "arbitrary")),
    )(x, w1)

    s1 = _bn_scale_shift(stats1, n * oh1 * ow1, params["g1"], params["beta1"])

    # ---- pass 1b fused with 2a: BN1+ReLU (in VMEM) -> conv2 + stats ---------
    y2_raw, stats2 = pl.pallas_call(
        functools.partial(_bn_relu_conv_stats_kernel, ow=ow2),
        grid=(n, oh2),
        in_specs=[
            pl.BlockSpec((1, oh1, ow1, cmid), lambda i, r: (i, 0, 0, 0)),
            pl.BlockSpec((2, cmid), lambda i, r: (0, 0)),
            pl.BlockSpec((KH * KW * cmid, cout), lambda i, r: (0, 0)),
        ],
        out_specs=[
            pl.BlockSpec((1, 1, ow2, cout), lambda i, r: (i, r, 0, 0)),
            pl.BlockSpec((2, cout), lambda i, r: (0, 0)),
        ],
        out_shape=[
            jax.ShapeDtypeStruct((n, oh2, ow2, cout), jnp.float32),
            jax.ShapeDtypeStruct((2, cout), jnp.float32),
        ],
        compiler_params=pltpu.CompilerParams(
            dimension_semantics=("arbitrary", "arbitrary")),
    )(y1_raw, s1, w2)

    s2 = _bn_scale_shift(stats2, n * oh2 * ow2, params["g2"], params["beta2"])

    # ---- pass 2b: BN2 + ReLU (elementwise, parallel across images) ----------
    out = pl.pallas_call(
        _bn_relu_kernel,
        grid=(n,),
        in_specs=[
            pl.BlockSpec((1, oh2, ow2, cout), lambda i: (i, 0, 0, 0)),
            pl.BlockSpec((2, cout), lambda i: (0, 0)),
        ],
        out_specs=pl.BlockSpec((1, oh2, ow2, cout), lambda i: (i, 0, 0, 0)),
        out_shape=jax.ShapeDtypeStruct((n, oh2, ow2, cout), jnp.float32),
        compiler_params=pltpu.CompilerParams(
            dimension_semantics=("parallel",)),
    )(y2_raw, s2)

    return jnp.transpose(out, (0, 3, 1, 2))                   # NHWC -> NCHW


# --------------------------------------------------------------------------
# Pure-JAX reference (conv_dtype selects operand precision for the convs)
# --------------------------------------------------------------------------
def _ref_stage(x_nchw, w, b, gamma, beta, conv_dtype):
    y = lax.conv_general_dilated(
        x_nchw.astype(conv_dtype), w.astype(conv_dtype),
        window_strides=(1, 1), padding="VALID",
        dimension_numbers=("NCHW", "OIHW", "NCHW"),
        preferred_element_type=jnp.float32)
    y = y + b.reshape(1, -1, 1, 1)
    mean = jnp.mean(y, axis=(0, 2, 3), keepdims=True)
    var = jnp.mean((y - mean) ** 2, axis=(0, 2, 3), keepdims=True)   # biased
    yn = (y - mean) * lax.rsqrt(var + BN_EPS)
    yn = yn * gamma.reshape(1, -1, 1, 1) + beta.reshape(1, -1, 1, 1)
    return jnp.maximum(yn, 0.0)


def across_reference(x_nchw, p, conv_dtype=jnp.float32):
    y = _ref_stage(x_nchw, p["w1"], p["b1"], p["g1"], p["beta1"], conv_dtype)
    return _ref_stage(y, p["w2"], p["b2"], p["g2"], p["beta2"], conv_dtype)


if __name__ == "__main__":
    in_channels, mid_channels, out_channels = 4, 8, 8
    N, H, W = 2, 16, 16

    key = jax.random.PRNGKey(0)
    k_x, k_w1, k_b1, k_w2, k_b2 = jax.random.split(key, 5)

    x = jax.random.normal(k_x, (N, in_channels, H, W), dtype=jnp.float32)

    # Deterministic parameters (shapes per nn.Conv2d / nn.BatchNorm2d).
    params = {
        "w1": 0.1 * jax.random.normal(k_w1, (mid_channels, in_channels, 3, 3), jnp.float32),
        "b1": 0.05 * jax.random.normal(k_b1, (mid_channels,), jnp.float32),
        "g1": jnp.ones((mid_channels,), jnp.float32),       # BN weight init = 1
        "beta1": jnp.zeros((mid_channels,), jnp.float32),   # BN bias init = 0
        "w2": 0.1 * jax.random.normal(k_w2, (out_channels, mid_channels, 3, 3), jnp.float32),
        "b2": 0.05 * jax.random.normal(k_b2, (out_channels,), jnp.float32),
        "g2": jnp.ones((out_channels,), jnp.float32),
        "beta2": jnp.zeros((out_channels,), jnp.float32),
    }

    out = jax.block_until_ready(jax.jit(across_forward)(x, params))
    assert out.shape == (N, out_channels, H - 4, W - 4), out.shape

    # Tight check vs. a reference using the same bf16 matmul operands as the kernel.
    ref_bf16 = jax.block_until_ready(across_reference(x, params, jnp.bfloat16))
    np.testing.assert_allclose(np.asarray(out), np.asarray(ref_bf16),
                               rtol=1e-2, atol=1e-2)
    # Loose check vs. the pure-f32 PyTorch-equivalent reference (the ~0.5-1%
    # deviation is the reviewer-requested bf16-operand MXU trade).
    ref_f32 = jax.block_until_ready(across_reference(x, params, jnp.float32))
    np.testing.assert_allclose(np.asarray(out), np.asarray(ref_f32),
                               rtol=5e-2, atol=5e-2)

    print("KERNEL_OK")
</pallas_src>

<mosaic_0001>
module attributes {stable_mosaic.version = 11 : i64} {
  func.func @_conv_stats_kernel(%arg0: i32, %arg1: i32, %arg2: memref<1x16x16x4xbf16, #tpu.memory_space<vmem>>, %arg3: memref<36x8xbf16, #tpu.memory_space<vmem>>, %arg4: memref<1x1x14x8xf32, #tpu.memory_space<vmem>>, %arg5: memref<2x8xf32, #tpu.memory_space<vmem>>) attributes {dimension_semantics = [#tpu.dimension_semantics<arbitrary>, #tpu.dimension_semantics<arbitrary>], iteration_bounds = array<i64: 2, 14>, scalar_prefetch = 0 : i64, scratch_operands = 0 : i64, tpu.core_type = #tpu.core_type<tc>, window_params = [{transform_indices = @transform_0, window_bounds = array<i64: 1, 16, 16, 4>}, {pipeline_mode = #tpu.pipeline_mode<synchronous>, transform_indices = @transform_1, window_bounds = array<i64: 36, 8>}, {transform_indices = @transform_2, window_bounds = array<i64: 1, 1, 14, 8>}, {pipeline_mode = #tpu.pipeline_mode<synchronous>, transform_indices = @transform_3, window_bounds = array<i64: 2, 8>}]} {
    %c0 = arith.constant 0 : index
    %0 = arith.index_cast %arg1 : i32 to index
    %c0_0 = arith.constant 0 : index
    %c0_1 = arith.constant 0 : index
    %1 = vector.load %arg2[%c0, %0, %c0_0, %c0_1] : memref<1x16x16x4xbf16, #tpu.memory_space<vmem>>, vector<1x3x16x4xbf16>
    %2 = vector.shape_cast %1 : vector<1x3x16x4xbf16> to vector<3x16x4xbf16>
    %3 = vector.extract_strided_slice %2 {offsets = [0, 0, 0], sizes = [1, 16, 4], strides = [1, 1, 1]} : vector<3x16x4xbf16> to vector<1x16x4xbf16>
    %4 = vector.shape_cast %3 : vector<1x16x4xbf16> to vector<16x4xbf16>
    %5 = vector.extract_strided_slice %4 {offsets = [0, 0], sizes = [14, 4], strides = [1, 1]} : vector<16x4xbf16> to vector<14x4xbf16>
    %6 = vector.extract_strided_slice %2 {offsets = [0, 0, 0], sizes = [1, 16, 4], strides = [1, 1, 1]} : vector<3x16x4xbf16> to vector<1x16x4xbf16>
    %7 = vector.shape_cast %6 : vector<1x16x4xbf16> to vector<16x4xbf16>
    %8 = vector.extract_strided_slice %7 {offsets = [1, 0], sizes = [14, 4], strides = [1, 1]} : vector<16x4xbf16> to vector<14x4xbf16>
    %9 = vector.extract_strided_slice %2 {offsets = [0, 0, 0], sizes = [1, 16, 4], strides = [1, 1, 1]} : vector<3x16x4xbf16> to vector<1x16x4xbf16>
    %10 = vector.shape_cast %9 : vector<1x16x4xbf16> to vector<16x4xbf16>
    %11 = vector.extract_strided_slice %10 {offsets = [2, 0], sizes = [14, 4], strides = [1, 1]} : vector<16x4xbf16> to vector<14x4xbf16>
    %12 = vector.extract_strided_slice %2 {offsets = [1, 0, 0], sizes = [1, 16, 4], strides = [1, 1, 1]} : vector<3x16x4xbf16> to vector<1x16x4xbf16>
    %13 = vector.shape_cast %12 : vector<1x16x4xbf16> to vector<16x4xbf16>
    %14 = vector.extract_strided_slice %13 {offsets = [0, 0], sizes = [14, 4], strides = [1, 1]} : vector<16x4xbf16> to vector<14x4xbf16>
    %15 = vector.extract_strided_slice %2 {offsets = [1, 0, 0], sizes = [1, 16, 4], strides = [1, 1, 1]} : vector<3x16x4xbf16> to vector<1x16x4xbf16>
    %16 = vector.shape_cast %15 : vector<1x16x4xbf16> to vector<16x4xbf16>
    %17 = vector.extract_strided_slice %16 {offsets = [1, 0], sizes = [14, 4], strides = [1, 1]} : vector<16x4xbf16> to vector<14x4xbf16>
    %18 = vector.extract_strided_slice %2 {offsets = [1, 0, 0], sizes = [1, 16, 4], strides = [1, 1, 1]} : vector<3x16x4xbf16> to vector<1x16x4xbf16>
    %19 = vector.shape_cast %18 : vector<1x16x4xbf16> to vector<16x4xbf16>
    %20 = vector.extract_strided_slice %19 {offsets = [2, 0], sizes = [14, 4], strides = [1, 1]} : vector<16x4xbf16> to vector<14x4xbf16>
    %21 = vector.extract_strided_slice %2 {offsets = [2, 0, 0], sizes = [1, 16, 4], strides = [1, 1, 1]} : vector<3x16x4xbf16> to vector<1x16x4xbf16>
    %22 = vector.shape_cast %21 : vector<1x16x4xbf16> to vector<16x4xbf16>
    %23 = vector.extract_strided_slice %22 {offsets = [0, 0], sizes = [14, 4], strides = [1, 1]} : vector<16x4xbf16> to vector<14x4xbf16>
    %24 = vector.extract_strided_slice %2 {offsets = [2, 0, 0], sizes = [1, 16, 4], strides = [1, 1, 1]} : vector<3x16x4xbf16> to vector<1x16x4xbf16>
    %25 = vector.shape_cast %24 : vector<1x16x4xbf16> to vector<16x4xbf16>
    %26 = vector.extract_strided_slice %25 {offsets = [1, 0], sizes = [14, 4], strides = [1, 1]} : vector<16x4xbf16> to vector<14x4xbf16>
    %27 = vector.extract_strided_slice %2 {offsets = [2, 0, 0], sizes = [1, 16, 4], strides = [1, 1, 1]} : vector<3x16x4xbf16> to vector<1x16x4xbf16>
    %28 = vector.shape_cast %27 : vector<1x16x4xbf16> to vector<16x4xbf16>
    %29 = vector.extract_strided_slice %28 {offsets = [2, 0], sizes = [14, 4], strides = [1, 1]} : vector<16x4xbf16> to vector<14x4xbf16>
    %30 = tpu.concatenate %5, %8, %11, %14, %17, %20, %23, %26, %29 in 1 : vector<14x4xbf16>, vector<14x4xbf16>, vector<14x4xbf16>, vector<14x4xbf16>, vector<14x4xbf16>, vector<14x4xbf16>, vector<14x4xbf16>, vector<14x4xbf16>, vector<14x4xbf16> -> vector<14x36xbf16>
    %c0_2 = arith.constant 0 : index
    %c0_3 = arith.constant 0 : index
    %31 = vector.load %arg3[%c0_2, %c0_3] : memref<36x8xbf16, #tpu.memory_space<vmem>>, vector<36x8xbf16>
    %cst = arith.constant dense<0.000000e+00> : vector<14x8xf32>
    %32 = tpu.matmul %30, %31, %cst {dimension_numbers = #tpu.dot_dimension_numbers<[1], [0], [0], [1], [0, 0, 1, 1], [], []>} : vector<14x36xbf16>, vector<36x8xbf16>, vector<14x8xf32> -> vector<14x8xf32>
    %c0_4 = arith.constant 0 : index
    %c0_5 = arith.constant 0 : index
    %c0_6 = arith.constant 0 : index
    %c0_7 = arith.constant 0 : index
    %33 = vector.load %arg4[%c0_4, %c0_5, %c0_6, %c0_7] : memref<1x1x14x8xf32, #tpu.memory_space<vmem>>, vector<1x1x14x8xf32>
    %34 = vector.shape_cast %33 : vector<1x1x14x8xf32> to vector<14x8xf32>
    %35 = vector.shape_cast %32 : vector<14x8xf32> to vector<1x1x14x8xf32>
    tpu.vector_store %arg4[%c0_4, %c0_5, %c0_6, %c0_7], %35 {strides = array<i32>} : memref<1x1x14x8xf32, #tpu.memory_space<vmem>>, vector<1x1x14x8xf32>,
    %c0_i32 = arith.constant 0 : i32
    %36 = arith.cmpi eq, %arg0, %c0_i32 : i32
    %c0_i32_8 = arith.constant 0 : i32
    %37 = arith.cmpi eq, %arg1, %c0_i32_8 : i32
    %38 = arith.andi %36, %37 : i1
    %39 = arith.extui %38 : i1 to i32
    %c0_i32_9 = arith.constant 0 : i32
    %40 = arith.cmpi ne, %39, %c0_i32_9 : i32
    scf.if %40 {
      %cst_16 = arith.constant 0.000000e+00 : f32
      %50 = vector.broadcast %cst_16 : f32 to vector<2x8xf32>
      %c0_17 = arith.constant 0 : index
      %c0_18 = arith.constant 0 : index
      %51 = vector.load %arg5[%c0_17, %c0_18] : memref<2x8xf32, #tpu.memory_space<vmem>>, vector<2x8xf32>
      tpu.vector_store %arg5[%c0_17, %c0_18], %50 {strides = array<i32>} : memref<2x8xf32, #tpu.memory_space<vmem>>, vector<2x8xf32>,
    } else {
    }
    %c0_10 = arith.constant 0 : index
    %c0_11 = arith.constant 0 : index
    %41 = vector.load %arg5[%c0_10, %c0_11] : memref<2x8xf32, #tpu.memory_space<vmem>>, vector<2x8xf32>
    %cst_12 = arith.constant dense<0.000000e+00> : vector<8xf32>
    %42 = vector.multi_reduction <add>, %32, %cst_12 [0] : vector<14x8xf32> to vector<8xf32>
    %43 = vector.shape_cast %42 : vector<8xf32> to vector<1x8xf32>
    %44 = arith.mulf %32, %32 : vector<14x8xf32>
    %cst_13 = arith.constant dense<0.000000e+00> : vector<8xf32>
    %45 = vector.multi_reduction <add>, %44, %cst_13 [0] : vector<14x8xf32> to vector<8xf32>
    %46 = vector.shape_cast %45 : vector<8xf32> to vector<1x8xf32>
    %47 = tpu.concatenate %43, %46 in 0 : vector<1x8xf32>, vector<1x8xf32> -> vector<2x8xf32>
    %48 = arith.addf %41, %47 : vector<2x8xf32>
    %c0_14 = arith.constant 0 : index
    %c0_15 = arith.constant 0 : index
    %49 = vector.load %arg5[%c0_14, %c0_15] : memref<2x8xf32, #tpu.memory_space<vmem>>, vector<2x8xf32>
    tpu.vector_store %arg5[%c0_14, %c0_15], %48 {strides = array<i32>} : memref<2x8xf32, #tpu.memory_space<vmem>>, vector<2x8xf32>,
    return
  }
  func.func @transform_0(%arg0: i32, %arg1: i32) -> (i32, i32, i32, i32) {
    %c0_i32 = arith.constant 0 : i32
    %c0_i32_0 = arith.constant 0 : i32
    %c0_i32_1 = arith.constant 0 : i32
    %c0_i32_2 = arith.constant 0 : i32
    return %arg0, %c0_i32, %c0_i32_0, %c0_i32_1 : i32, i32, i32, i32
  }
  func.func @transform_1(%arg0: i32, %arg1: i32) -> (i32, i32) {
    %c0_i32 = arith.constant 0 : i32
    %c0_i32_0 = arith.constant 0 : i32
    %c0_i32_1 = arith.constant 0 : i32
    return %c0_i32, %c0_i32_0 : i32, i32
  }
  func.func @transform_2(%arg0: i32, %arg1: i32) -> (i32, i32, i32, i32) {
    %c0_i32 = arith.constant 0 : i32
    %c0_i32_0 = arith.constant 0 : i32
    %c0_i32_1 = arith.constant 0 : i32
    return %arg0, %arg1, %c0_i32, %c0_i32_0 : i32, i32, i32, i32
  }
  func.func @transform_3(%arg0: i32, %arg1: i32) -> (i32, i32) {
    %c0_i32 = arith.constant 0 : i32
    %c0_i32_0 = arith.constant 0 : i32
    %c0_i32_1 = arith.constant 0 : i32
    return %c0_i32, %c0_i32_0 : i32, i32
  }
}

module attributes {stable_mosaic.version = 11 : i64} {
  func.func @_bn_relu_conv_stats_kernel(%arg0: i32, %arg1: i32, %arg2: memref<1x14x14x8xf32, #tpu.memory_space<vmem>>, %arg3: memref<2x8xf32, #tpu.memory_space<vmem>>, %arg4: memref<72x8xbf16, #tpu.memory_space<vmem>>, %arg5: memref<1x1x12x8xf32, #tpu.memory_space<vmem>>, %arg6: memref<2x8xf32, #tpu.memory_space<vmem>>) attributes {dimension_semantics = [#tpu.dimension_semantics<arbitrary>, #tpu.dimension_semantics<arbitrary>], iteration_bounds = array<i64: 2, 12>, scalar_prefetch = 0 : i64, scratch_operands = 0 : i64, tpu.core_type = #tpu.core_type<tc>, window_params = [{transform_indices = @transform_0, window_bounds = array<i64: 1, 14, 14, 8>}, {pipeline_mode = #tpu.pipeline_mode<synchronous>, transform_indices = @transform_1, window_bounds = array<i64: 2, 8>}, {pipeline_mode = #tpu.pipeline_mode<synchronous>, transform_indices = @transform_2, window_bounds = array<i64: 72, 8>}, {transform_indices = @transform_3, window_bounds = array<i64: 1, 1, 12, 8>}, {pipeline_mode = #tpu.pipeline_mode<synchronous>, transform_indices = @transform_4, window_bounds = array<i64: 2, 8>}]} {
    %c0 = arith.constant 0 : index
    %0 = arith.index_cast %arg1 : i32 to index
    %c0_0 = arith.constant 0 : index
    %c0_1 = arith.constant 0 : index
    %1 = vector.load %arg2[%c0, %0, %c0_0, %c0_1] : memref<1x14x14x8xf32, #tpu.memory_space<vmem>>, vector<1x3x14x8xf32>
    %2 = vector.shape_cast %1 : vector<1x3x14x8xf32> to vector<3x14x8xf32>
    %c0_2 = arith.constant 0 : index
    %c0_3 = arith.constant 0 : index
    %3 = vector.load %arg3[%c0_2, %c0_3] : memref<2x8xf32, #tpu.memory_space<vmem>>, vector<1x8xf32>
    %4 = vector.shape_cast %3 : vector<1x8xf32> to vector<1x1x8xf32>
    %5 = vector.broadcast %4 : vector<1x1x8xf32> to vector<3x14x8xf32>
    %6 = arith.mulf %2, %5 : vector<3x14x8xf32>
    %c1 = arith.constant 1 : index
    %c0_4 = arith.constant 0 : index
    %7 = vector.load %arg3[%c1, %c0_4] : memref<2x8xf32, #tpu.memory_space<vmem>>, vector<1x8xf32>
    %8 = vector.shape_cast %7 : vector<1x8xf32> to vector<1x1x8xf32>
    %9 = vector.broadcast %8 : vector<1x1x8xf32> to vector<3x14x8xf32>
    %10 = arith.addf %6, %9 : vector<3x14x8xf32>
    %cst = arith.constant 0.000000e+00 : f32
    %11 = vector.broadcast %cst : f32 to vector<3x14x8xf32>
    %12 = arith.maximumf %10, %11 : vector<3x14x8xf32>
    %13 = arith.truncf %12 : vector<3x14x8xf32> to vector<3x14x8xbf16>
    %14 = vector.extract_strided_slice %13 {offsets = [0, 0, 0], sizes = [1, 14, 8], strides = [1, 1, 1]} : vector<3x14x8xbf16> to vector<1x14x8xbf16>
    %15 = vector.shape_cast %14 : vector<1x14x8xbf16> to vector<14x8xbf16>
    %16 = vector.extract_strided_slice %15 {offsets = [0, 0], sizes = [12, 8], strides = [1, 1]} : vector<14x8xbf16> to vector<12x8xbf16>
    %17 = vector.extract_strided_slice %13 {offsets = [0, 0, 0], sizes = [1, 14, 8], strides = [1, 1, 1]} : vector<3x14x8xbf16> to vector<1x14x8xbf16>
    %18 = vector.shape_cast %17 : vector<1x14x8xbf16> to vector<14x8xbf16>
    %19 = vector.extract_strided_slice %18 {offsets = [1, 0], sizes = [12, 8], strides = [1, 1]} : vector<14x8xbf16> to vector<12x8xbf16>
    %20 = vector.extract_strided_slice %13 {offsets = [0, 0, 0], sizes = [1, 14, 8], strides = [1, 1, 1]} : vector<3x14x8xbf16> to vector<1x14x8xbf16>
    %21 = vector.shape_cast %20 : vector<1x14x8xbf16> to vector<14x8xbf16>
    %22 = vector.extract_strided_slice %21 {offsets = [2, 0], sizes = [12, 8], strides = [1, 1]} : vector<14x8xbf16> to vector<12x8xbf16>
    %23 = vector.extract_strided_slice %13 {offsets = [1, 0, 0], sizes = [1, 14, 8], strides = [1, 1, 1]} : vector<3x14x8xbf16> to vector<1x14x8xbf16>
    %24 = vector.shape_cast %23 : vector<1x14x8xbf16> to vector<14x8xbf16>
    %25 = vector.extract_strided_slice %24 {offsets = [0, 0], sizes = [12, 8], strides = [1, 1]} : vector<14x8xbf16> to vector<12x8xbf16>
    %26 = vector.extract_strided_slice %13 {offsets = [1, 0, 0], sizes = [1, 14, 8], strides = [1, 1, 1]} : vector<3x14x8xbf16> to vector<1x14x8xbf16>
    %27 = vector.shape_cast %26 : vector<1x14x8xbf16> to vector<14x8xbf16>
    %28 = vector.extract_strided_slice %27 {offsets = [1, 0], sizes = [12, 8], strides = [1, 1]} : vector<14x8xbf16> to vector<12x8xbf16>
    %29 = vector.extract_strided_slice %13 {offsets = [1, 0, 0], sizes = [1, 14, 8], strides = [1, 1, 1]} : vector<3x14x8xbf16> to vector<1x14x8xbf16>
    %30 = vector.shape_cast %29 : vector<1x14x8xbf16> to vector<14x8xbf16>
    %31 = vector.extract_strided_slice %30 {offsets = [2, 0], sizes = [12, 8], strides = [1, 1]} : vector<14x8xbf16> to vector<12x8xbf16>
    %32 = vector.extract_strided_slice %13 {offsets = [2, 0, 0], sizes = [1, 14, 8], strides = [1, 1, 1]} : vector<3x14x8xbf16> to vector<1x14x8xbf16>
    %33 = vector.shape_cast %32 : vector<1x14x8xbf16> to vector<14x8xbf16>
    %34 = vector.extract_strided_slice %33 {offsets = [0, 0], sizes = [12, 8], strides = [1, 1]} : vector<14x8xbf16> to vector<12x8xbf16>
    %35 = vector.extract_strided_slice %13 {offsets = [2, 0, 0], sizes = [1, 14, 8], strides = [1, 1, 1]} : vector<3x14x8xbf16> to vector<1x14x8xbf16>
    %36 = vector.shape_cast %35 : vector<1x14x8xbf16> to vector<14x8xbf16>
    %37 = vector.extract_strided_slice %36 {offsets = [1, 0], sizes = [12, 8], strides = [1, 1]} : vector<14x8xbf16> to vector<12x8xbf16>
    %38 = vector.extract_strided_slice %13 {offsets = [2, 0, 0], sizes = [1, 14, 8], strides = [1, 1, 1]} : vector<3x14x8xbf16> to vector<1x14x8xbf16>
    %39 = vector.shape_cast %38 : vector<1x14x8xbf16> to vector<14x8xbf16>
    %40 = vector.extract_strided_slice %39 {offsets = [2, 0], sizes = [12, 8], strides = [1, 1]} : vector<14x8xbf16> to vector<12x8xbf16>
    %41 = tpu.concatenate %16, %19, %22, %25, %28, %31, %34, %37, %40 in 1 : vector<12x8xbf16>, vector<12x8xbf16>, vector<12x8xbf16>, vector<12x8xbf16>, vector<12x8xbf16>, vector<12x8xbf16>, vector<12x8xbf16>, vector<12x8xbf16>, vector<12x8xbf16> -> vector<12x72xbf16>
    %c0_5 = arith.constant 0 : index
    %c0_6 = arith.constant 0 : index
    %42 = vector.load %arg4[%c0_5, %c0_6] : memref<72x8xbf16, #tpu.memory_space<vmem>>, vector<72x8xbf16>
    %cst_7 = arith.constant dense<0.000000e+00> : vector<12x8xf32>
    %43 = tpu.matmul %41, %42, %cst_7 {dimension_numbers = #tpu.dot_dimension_numbers<[1], [0], [0], [1], [0, 0, 1, 1], [], []>} : vector<12x72xbf16>, vector<72x8xbf16>, vector<12x8xf32> -> vector<12x8xf32>
    %c0_8 = arith.constant 0 : index
    %c0_9 = arith.constant 0 : index
    %c0_10 = arith.constant 0 : index
    %c0_11 = arith.constant 0 : index
    %44 = vector.load %arg5[%c0_8, %c0_9, %c0_10, %c0_11] : memref<1x1x12x8xf32, #tpu.memory_space<vmem>>, vector<1x1x12x8xf32>
    %45 = vector.shape_cast %44 : vector<1x1x12x8xf32> to vector<12x8xf32>
    %46 = vector.shape_cast %43 : vector<12x8xf32> to vector<1x1x12x8xf32>
    tpu.vector_store %arg5[%c0_8, %c0_9, %c0_10, %c0_11], %46 {strides = array<i32>} : memref<1x1x12x8xf32, #tpu.memory_space<vmem>>, vector<1x1x12x8xf32>,
    %c0_i32 = arith.constant 0 : i32
    %47 = arith.cmpi eq, %arg0, %c0_i32 : i32
    %c0_i32_12 = arith.constant 0 : i32
    %48 = arith.cmpi eq, %arg1, %c0_i32_12 : i32
    %49 = arith.andi %47, %48 : i1
    %50 = arith.extui %49 : i1 to i32
    %c0_i32_13 = arith.constant 0 : i32
    %51 = arith.cmpi ne, %50, %c0_i32_13 : i32
    scf.if %51 {
      %cst_20 = arith.constant 0.000000e+00 : f32
      %61 = vector.broadcast %cst_20 : f32 to vector<2x8xf32>
      %c0_21 = arith.constant 0 : index
      %c0_22 = arith.constant 0 : index
      %62 = vector.load %arg6[%c0_21, %c0_22] : memref<2x8xf32, #tpu.memory_space<vmem>>, vector<2x8xf32>
      tpu.vector_store %arg6[%c0_21, %c0_22], %61 {strides = array<i32>} : memref<2x8xf32, #tpu.memory_space<vmem>>, vector<2x8xf32>,
    } else {
    }
    %c0_14 = arith.constant 0 : index
    %c0_15 = arith.constant 0 : index
    %52 = vector.load %arg6[%c0_14, %c0_15] : memref<2x8xf32, #tpu.memory_space<vmem>>, vector<2x8xf32>
    %cst_16 = arith.constant dense<0.000000e+00> : vector<8xf32>
    %53 = vector.multi_reduction <add>, %43, %cst_16 [0] : vector<12x8xf32> to vector<8xf32>
    %54 = vector.shape_cast %53 : vector<8xf32> to vector<1x8xf32>
    %55 = arith.mulf %43, %43 : vector<12x8xf32>
    %cst_17 = arith.constant dense<0.000000e+00> : vector<8xf32>
    %56 = vector.multi_reduction <add>, %55, %cst_17 [0] : vector<12x8xf32> to vector<8xf32>
    %57 = vector.shape_cast %56 : vector<8xf32> to vector<1x8xf32>
    %58 = tpu.concatenate %54, %57 in 0 : vector<1x8xf32>, vector<1x8xf32> -> vector<2x8xf32>
    %59 = arith.addf %52, %58 : vector<2x8xf32>
    %c0_18 = arith.constant 0 : index
    %c0_19 = arith.constant 0 : index
    %60 = vector.load %arg6[%c0_18, %c0_19] : memref<2x8xf32, #tpu.memory_space<vmem>>, vector<2x8xf32>
    tpu.vector_store %arg6[%c0_18, %c0_19], %59 {strides = array<i32>} : memref<2x8xf32, #tpu.memory_space<vmem>>, vector<2x8xf32>,
    return
  }
  func.func @transform_0(%arg0: i32, %arg1: i32) -> (i32, i32, i32, i32) {
    %c0_i32 = arith.constant 0 : i32
    %c0_i32_0 = arith.constant 0 : i32
    %c0_i32_1 = arith.constant 0 : i32
    %c0_i32_2 = arith.constant 0 : i32
    return %arg0, %c0_i32, %c0_i32_0, %c0_i32_1 : i32, i32, i32, i32
  }
  func.func @transform_1(%arg0: i32, %arg1: i32) -> (i32, i32) {
    %c0_i32 = arith.constant 0 : i32
    %c0_i32_0 = arith.constant 0 : i32
    %c0_i32_1 = arith.constant 0 : i32
    return %c0_i32, %c0_i32_0 : i32, i32
  }
  func.func @transform_2(%arg0: i32, %arg1: i32) -> (i32, i32) {
    %c0_i32 = arith.constant 0 : i32
    %c0_i32_0 = arith.constant 0 : i32
    %c0_i32_1 = arith.constant 0 : i32
    return %c0_i32, %c0_i32_0 : i32, i32
  }
  func.func @transform_3(%arg0: i32, %arg1: i32) -> (i32, i32, i32, i32) {
    %c0_i32 = arith.constant 0 : i32
    %c0_i32_0 = arith.constant 0 : i32
    %c0_i32_1 = arith.constant 0 : i32
    return %arg0, %arg1, %c0_i32, %c0_i32_0 : i32, i32, i32, i32
  }
  func.func @transform_4(%arg0: i32, %arg1: i32) -> (i32, i32) {
    %c0_i32 = arith.constant 0 : i32
    %c0_i32_0 = arith.constant 0 : i32
    %c0_i32_1 = arith.constant 0 : i32
    return %c0_i32, %c0_i32_0 : i32, i32
  }
}

module attributes {stable_mosaic.version = 11 : i64} {
  func.func @_bn_relu_kernel(%arg0: i32, %arg1: memref<1x12x12x8xf32, #tpu.memory_space<vmem>>, %arg2: memref<2x8xf32, #tpu.memory_space<vmem>>, %arg3: memref<1x12x12x8xf32, #tpu.memory_space<vmem>>) attributes {dimension_semantics = [#tpu.dimension_semantics<parallel>], iteration_bounds = array<i64: 2>, scalar_prefetch = 0 : i64, scratch_operands = 0 : i64, tpu.core_type = #tpu.core_type<tc>, window_params = [{transform_indices = @transform_0, window_bounds = array<i64: 1, 12, 12, 8>}, {pipeline_mode = #tpu.pipeline_mode<synchronous>, transform_indices = @transform_1, window_bounds = array<i64: 2, 8>}, {transform_indices = @transform_2, window_bounds = array<i64: 1, 12, 12, 8>}]} {
    %c0 = arith.constant 0 : index
    %c0_0 = arith.constant 0 : index
    %c0_1 = arith.constant 0 : index
    %c0_2 = arith.constant 0 : index
    %0 = vector.load %arg1[%c0, %c0_0, %c0_1, %c0_2] : memref<1x12x12x8xf32, #tpu.memory_space<vmem>>, vector<1x12x12x8xf32>
    %c0_3 = arith.constant 0 : index
    %c0_4 = arith.constant 0 : index
    %1 = vector.load %arg2[%c0_3, %c0_4] : memref<2x8xf32, #tpu.memory_space<vmem>>, vector<1x8xf32>
    %2 = vector.shape_cast %1 : vector<1x8xf32> to vector<1x1x1x8xf32>
    %3 = vector.broadcast %2 : vector<1x1x1x8xf32> to vector<1x12x12x8xf32>
    %4 = arith.mulf %0, %3 : vector<1x12x12x8xf32>
    %c1 = arith.constant 1 : index
    %c0_5 = arith.constant 0 : index
    %5 = vector.load %arg2[%c1, %c0_5] : memref<2x8xf32, #tpu.memory_space<vmem>>, vector<1x8xf32>
    %6 = vector.shape_cast %5 : vector<1x8xf32> to vector<1x1x1x8xf32>
    %7 = vector.broadcast %6 : vector<1x1x1x8xf32> to vector<1x12x12x8xf32>
    %8 = arith.addf %4, %7 : vector<1x12x12x8xf32>
    %cst = arith.constant 0.000000e+00 : f32
    %9 = vector.broadcast %cst : f32 to vector<1x12x12x8xf32>
    %10 = arith.maximumf %8, %9 : vector<1x12x12x8xf32>
    %c0_6 = arith.constant 0 : index
    %c0_7 = arith.constant 0 : index
    %c0_8 = arith.constant 0 : index
    %c0_9 = arith.constant 0 : index
    %11 = vector.load %arg3[%c0_6, %c0_7, %c0_8, %c0_9] : memref<1x12x12x8xf32, #tpu.memory_space<vmem>>, vector<1x12x12x8xf32>
    tpu.vector_store %arg3[%c0_6, %c0_7, %c0_8, %c0_9], %10 {strides = array<i32>} : memref<1x12x12x8xf32, #tpu.memory_space<vmem>>, vector<1x12x12x8xf32>,
    return
  }
  func.func @transform_0(%arg0: i32) -> (i32, i32, i32, i32) {
    %c0_i32 = arith.constant 0 : i32
    %c0_i32_0 = arith.constant 0 : i32
    %c0_i32_1 = arith.constant 0 : i32
    %c0_i32_2 = arith.constant 0 : i32
    return %arg0, %c0_i32, %c0_i32_0, %c0_i32_1 : i32, i32, i32, i32
  }
  func.func @transform_1(%arg0: i32) -> (i32, i32) {
    %c0_i32 = arith.constant 0 : i32
    %c0_i32_0 = arith.constant 0 : i32
    %c0_i32_1 = arith.constant 0 : i32
    return %c0_i32, %c0_i32_0 : i32, i32
  }
  func.func @transform_2(%arg0: i32) -> (i32, i32, i32, i32) {
    %c0_i32 = arith.constant 0 : i32
    %c0_i32_0 = arith.constant 0 : i32
    %c0_i32_1 = arith.constant 0 : i32
    %c0_i32_2 = arith.constant 0 : i32
    return %arg0, %c0_i32, %c0_i32_0, %c0_i32_1 : i32, i32, i32, i32
  }
}

</mosaic_0001>

<bundles_post_ra>
// kernel: across_forward.3
= control target key start
LH: loop header
LB: loop body
LE: loop exit
PB: predicated region body
PF: predicated region fallthrough
CT: control target
= control target key end

     0   :  { %s612_s12 = smov 0   ;;  %s614_s13 = smov 0   ;;  %s700_s0 = inlined_call_operand.vmem [shape: bf16[2,16,16,4], index: 0, kind: input, shape index: {}]   ;;  %s701_s1 = inlined_call_operand.vmem [shape: bf16[36,8], index: 1, kind: input, shape index: {}]   ;;  %s702_s2 = inlined_call_operand.vmem [shape: f32[2,14,14,8], index: 2, kind: output, shape index: {0}]   ;;  %s703_s3 = inlined_call_operand.vmem [shape: f32[2,8], index: 3, kind: output, shape index: {1}]  }
   0x1   :  { %s616_s14 = smov 0   ;;  %s618_s15 = smov 0  }
   0x2   :  { %s620_s16 = smov 0  }
   0x3 LB: > { %s23_s17 = sadd.s32 1, %s573_s14  ;;  %s26_s18 = sadd.s32 1, %s577_s15  ;;  %s581_s16 = sphi %s620_s16, %s14_s16   ;;  %s577_s15 = sphi %s618_s15, %s707_s15   ;;  %s573_s14 = sphi %s616_s14, %s706_s14   ;;  %s569_s13 = sphi %s614_s13, %s705_s13   ;;  %s565_s12 = sphi %s612_s12, %s704_s12  }
   0x4   : > { %p24_p0 = scmp.ge.s32.totalorder %s23_s17, 14  ;;  %p456_p1 = scmp.ge.s32.totalorder %s581_s16, 1 }
   0x5   : > { %p149_p2 = scmp.lt.s32.totalorder %s581_s16, 29 }
   0x6   : > { %s709_s17 = smov (%p24_p0, %s23_s17), 0  ;;  %s711_s18 = smov (!%p24_p0, %s26_s18), %s577_s15 }
   0x7   : > { %p150_p3 = pnand %p456_p1, %p149_p2  ;;  %p28_p4 = scmp.ge.s32.totalorder %s711_s18, 2 }
   0x8   : > { %p177_p5 = scmp.lt.s32.totalorder (!%p150_p3), %s569_s13, 1  ;;  %s487_s20 = sshll.u32 (!%p150_p3), %s565_s12, 3 }
   0x9   : > { %s713_s18 = smov (%p28_p4, %s711_s18), 0  ;;  %153 = sbr.rel (%p150_p3) target bundleno = 313 (0x139), region = 28 }
   0xa   : > { %s583_s26 = smov (!%p150_p3), 12   ;;  %s584_s27 = smov (!%p150_p3), 8  }
   0xb   : > { %s585_s28 = smov (!%p150_p3), 20   ;;  %s586_s29 = smov (!%p150_p3), 16  }
   0xc   : > { %s587_s30 = smov (!%p150_p3), 4   ;;  %s588_s4 = smov (!%p150_p3), 24  }
   0xd   : > { %s589_s5 = smov (!%p150_p3), 32   ;;  %s590_s6 = smov (!%p150_p3), 28  }
   0xe   : > { %s648_s19 = scalar_select %p177_p5, %s569_s13, 1  ;;  %v284_v18 = vld [vmem:[%s701_s1 + $0x10] sm:$0x3]  ;;  %vm303_vm0 = vcmask 1041408   ;;  %v492_v22 = vld [vmem:[%s701_s1 + $0x8] sm:$0xff]  ;;  %v491_v23 = vld [vmem:[%s701_s1] sm:$0xff] }
   0xf   : > { %v294_v19 = vunpack.c.l.b16 %v284_v18  ;;  %vm256_vm1 = vcmask 31744   ;;  %vm259_vm2 = vcmask 64512   ;;  %vm262_vm3 = vcmask 97280   ;;  %p324_p6 = scmp.eq.s32.totalorder %s569_s13, 0  ;;  %p325_p7 = scmp.eq.s32.totalorder %s565_s12, 0 }
  0x10   : > { %s486_s21 = sshll.u32 %s648_s19, 7  ;;  %vm265_vm4 = vcmask 130048   ;;  %vm268_vm5 = vcmask 162816   ;;  %vm271_vm6 = vcmask 195584   ;;  %vm274_vm7 = vcmask 228352   ;;  %p184_p9 = scmp.lt.s32.totalorder %s565_s12, 13 }
  0x11   : > { %s181_s24 = scalar_lea.vmem %s700_s0, %s486_s21  ;;  %v297_v20 = vpack.c.b16 %v294_v19, %v294_v19  ;;  %vm277_vm8 = vcmask 261120   ;;  %vm300_vm9 = vcmask 293888   ;;  %p326_p8 = pnand %p325_p7, %p324_p6  ;;  %vm322_vm10 = vcmask 62464  }
  0x12   : > { %s194_s25 = scalar_lea.vmem %s181_s24, %s487_s20  ;;  %s715_s12 = smov (!%p184_p9, %s565_s12), 13 }
  0x13   : > { %v488_v0 = vld [vmem:[%s194_s25] sm:$0xff]  ;;  %v489_v1 = vld [vmem:[%s194_s25 + $0x8] sm:$0xff]  ;;  %v490_v8 = vld [vmem:[%s194_s25 + $0x10] sm:$0xff]  ;;  %v305_v21 = vsel %vm303_vm0, %v297_v20, 0  ;;  %s493_s21 = smul.u32 28, %s648_s19  ;;  %s459_s22 = sshll.u32 %s715_s12, 1 }
  0x14   : > { %v215_v2 = vrot.slane %v488_v0, 1  ;;  %223 = vrot.lane.b32.xlu1 %v489_v1, %s583_s26  ;;  %v209_v3 = vshll.u32 %v488_v0, 16  ;;  %v226_v4 = vshrl.u32 %v489_v1, 16  ;;  %v228_v5 = vshll.u32 %v489_v1, 16  ;;  %312 = vmatpush.bf16.msra.mxu0 %v305_v21 }
  0x15   : > { %v207_v6 = vshrl.u32 %v488_v0, 16  ;;  %v234_v9 = vrot.slane %v489_v1, 1  ;;  %v247_v13 = vshll.u32 %v490_v8, 16  ;;  %v245_v14 = vshrl.u32 %v490_v8, 16  ;;  %s188_s23 = sadd.s32 %s493_s21, %s459_s22 }
  0x16   : > { %216 = vrot.lane.b32.xlu0 %v215_v2, %s584_s27  ;;  %v211_v7 = vrot.slane %v209_v3, 1  ;;  %v230_v10 = vrot.slane %v228_v5, 1  ;;  %v253_v16 = vrot.slane %v490_v8, 1  ;;  %s460_s24 = sshll.u32 %s188_s23, 3 }
  0x17   : > { %235 = vrot.lane.b32.xlu2 %v234_v9, %s585_s28  ;;  %v249_v15 = vrot.slane %v247_v13, 1  ;;  %s190_s27 = scalar_lea.vmem %s702_s2, %s460_s24 }
  0x18   : > { %v231_v11 = vor.u32 %v230_v10, %v226_v4  ;;  %v212_v12 = vor.u32 %v211_v7, %v207_v6  ;;  %313 = vmatpush.bf16.msra.mxu0 %v492_v22 }
  0x19   : > { %v250_v17 = vor.u32 %v249_v15, %v245_v14 }
  0x1c   : > { %232 = vrot.lane.b32.xlu1 %v231_v11, %s586_s29  ;;  %314 = vmatpush.bf16.msra.mxu0 %v491_v23 }
  0x1e   : > { %213 = vrot.lane.b32.xlu0 %v212_v12, %s587_s30 }
  0x1f   : > { %242 = vrot.lane.b32.xlu2 %v490_v8, %s588_s4 }
  0x24   : > { %254 = vrot.lane.b32.xlu1 %v253_v16, %s589_s5 }
  0x26   : > { %251 = vrot.lane.b32.xlu0 %v250_v17, %s590_s6 }
  0x71   : > { %v236_v26 = vpop.permute.xlu2 %235 }
  0x79   : > { %v243_v33 = vpop.permute.xlu2 %242 }
  0x86   : > { %v224_v24 = vpop.permute.xlu1 %223 }
  0x88   : > { %v217_v25 = vpop.permute.xlu0 %216 }
  0x8e   : > { %v233_v27 = vpop.permute.xlu1 %232 }
  0x90   : > { %v214_v28 = vpop.permute.xlu0 %213 }
  0x91   : > { %v258_v29 = vsel %vm256_vm1, %v488_v0, %v214_v28 }
  0x92   : > { %v261_v30 = vsel %vm259_vm2, %v258_v29, %v217_v25 }
  0x93   : > { %v264_v31 = vsel %vm262_vm3, %v261_v30, %v224_v24 }
  0x94   : > { %v267_v32 = vsel %vm265_vm4, %v264_v31, %v233_v27 }
  0x95   : > { %v270_v34 = vsel %vm268_vm5, %v267_v32, %v236_v26 }
  0x96   : > { %v255_v35 = vpop.permute.xlu1 %254  ;;  %v273_v36 = vsel %vm271_vm6, %v270_v34, %v243_v33 }
  0x98   : > { %v252_v37 = vpop.permute.xlu0 %251 }
  0x99   : > { %v276_v38 = vsel %vm274_vm7, %v273_v36, %v252_v37 }
  0x9a   : > { %v279_v39 = vsel %vm277_vm8, %v276_v38, %v255_v35 }
  0x9b   : > { %483 = vmatmul.msk.bf16.vlgmr.msra.gmra.mxu0 %vm300_vm9, %v279_v39 }
 0x118   : > { %v316_v40 = vpop.f32.mrf.mxu0 }
 0x119   : > { %321 = vst.msk [vmem:[%s190_s27] sm:$0xff] %vm259_vm2, %v316_v40 }
 0x11d   : > { %329 = sbr.rel (%p326_p8) target bundleno = 292 (0x124), region = 32 }
 0x120   : > { %v318_v41 = vpop.f32.mrf.mxu0 }
 0x121   : > { %323 = vst.msk [vmem:[%s190_s27 + $0x8] sm:$0x3f] %vm322_vm10, %v318_v41 }
 0x122   : > { %vm330_vm11 = vcmask 58368   ;;  %v591_v42 = vmov 0.0  }
 0x123   : > { %331 = vst.msk [vmem:[%s703_s3] sm:$0x3] %vm330_vm11, %v591_v42 }
 0x124 PF: > { %v333_v43 = vsel %vm259_vm2, %v316_v40, 0.0  ;;  %v334_v44 = vsel %vm322_vm10, %v318_v41, 0.0  ;;  %v342_v45 = vmul.f32 %v316_v40, %v316_v40  ;;  %v343_v46 = vmul.f32 %v318_v41, %v318_v41 }
 0x125   : > { %v335_v47 = vadd.f32 %v334_v44, %v333_v43  ;;  %vm353_vm12 = vcmask 1040384   ;;  %vm356_vm13 = vcmask 58368  }
 0x126   : > { %v344_v48 = vsel %vm259_vm2, %v342_v45, 0.0  ;;  %v345_v49 = vsel %vm322_vm10, %v343_v46, 0.0 }
 0x127   : > { %v336_v50 = vrot.slane %v335_v47, 4  ;;  %v346_v51 = vadd.f32 %v345_v49, %v344_v48 }
 0x129   : > { %v337_v52 = vadd.f32 %v336_v50, %v335_v47  ;;  %v347_v53 = vrot.slane %v346_v51, 4 }
 0x12a   : > { %v332_v62 = vld [vmem:[%s703_s3] sm:$0x3] }
 0x12b   : > { %v338_v54 = vrot.slane %v337_v52, 2  ;;  %v348_v55 = vadd.f32 %v347_v53, %v346_v51 }
 0x12d   : > { %v339_v56 = vadd.f32 %v338_v54, %v337_v52  ;;  %v349_v57 = vrot.slane %v348_v55, 2 }
 0x12f   : > { %v340_v58 = vrot.slane %v339_v56, 1  ;;  %v350_v59 = vadd.f32 %v349_v57, %v348_v55 }
 0x131   : > { %v341_v60 = vadd.f32 %v340_v58, %v339_v56  ;;  %v351_v61 = vrot.slane %v350_v59, 1 }
 0x133   : > { %v352_v63 = vadd.f32 %v351_v61, %v350_v59 }
 0x135   : > { %v354_v0 = vsel %vm353_vm12, %v341_v60, %v352_v63 }
 0x136   : > { %v355_v1 = vadd.f32 %v354_v0, %v332_v62 }
 0x138   : > { %357 = vst.msk [vmem:[%s703_s3] sm:$0x3] %vm356_vm13, %v355_v1 }
 0x139 PF: > { %s14_s16 = sadd.s32 1, %s581_s16   ;;  %s704_s12 = smov %s573_s14 }
 0x13a   : > { %p11_p10 = scmp.ge.s32.totalorder %s14_s16, 30   ;;  %s705_s13 = smov %s577_s15 }
 0x13b   : > { %s706_s14 = smov %s709_s17  ;;  %s707_s15 = smov %s713_s18 }
 0x13c   :  { %13 = sbr.rel (!%p11_p10) target bundleno = 3 (0x3), region = 71 }

// kernel: across_forward.4
= control target key start
LH: loop header
LB: loop body
LE: loop exit
PB: predicated region body
PF: predicated region fallthrough
CT: control target
= control target key end

     0   :  { %s681_s15 = smov 0   ;;  %s683_s16 = smov 0   ;;  %s781_s0 = inlined_call_operand.vmem [shape: f32[2,14,14,8], index: 0, kind: input, shape index: {}]   ;;  %s782_s1 = inlined_call_operand.vmem [shape: f32[2,8], index: 1, kind: input, shape index: {}]   ;;  %s783_s2 = inlined_call_operand.vmem [shape: bf16[72,8], index: 2, kind: input, shape index: {}]   ;;  %s784_s3 = inlined_call_operand.vmem [shape: f32[2,12,12,8], index: 3, kind: output, shape index: {0}]   ;;  %s785_s4 = inlined_call_operand.vmem [shape: f32[2,8], index: 4, kind: output, shape index: {1}]  }
   0x1   :  { %s685_s17 = smov 0   ;;  %s687_s18 = smov 0  }
   0x2   :  { %s689_s19 = smov 0  }
   0x3 LB: > { %s24_s20 = sadd.s32 1, %s637_s17  ;;  %s27_s21 = sadd.s32 1, %s641_s18  ;;  %s645_s19 = sphi %s689_s19, %s15_s19   ;;  %s641_s18 = sphi %s687_s18, %s789_s18   ;;  %s637_s17 = sphi %s685_s17, %s788_s17   ;;  %s633_s16 = sphi %s683_s16, %s787_s16   ;;  %s629_s15 = sphi %s681_s15, %s786_s15  }
   0x4   : > { %p25_p0 = scmp.ge.s32.totalorder %s24_s20, 12  ;;  %p526_p1 = scmp.ge.s32.totalorder %s645_s19, 1 }
   0x5   : > { %p174_p2 = scmp.lt.s32.totalorder %s645_s19, 25 }
   0x6   : > { %s791_s20 = smov (%p25_p0, %s24_s20), 0  ;;  %s793_s21 = smov (!%p25_p0, %s27_s21), %s641_s18 }
   0x7   : > { %p175_p3 = pnand %p526_p1, %p174_p2  ;;  %p29_p4 = scmp.ge.s32.totalorder %s793_s21, 2 }
   0x8   : > { %p204_p5 = scmp.lt.s32.totalorder (!%p175_p3), %s633_s16, 1  ;;  %s530_s24 = sshll.u32 (!%p175_p3), %s629_s15, 4 }
   0x9   : > { %s795_s21 = smov (%p29_p4, %s793_s21), 0  ;;  %178 = sbr.rel (%p175_p3) target bundleno = 326 (0x146), region = 32 }
   0xa   : > { %s647_s9 = smov (!%p175_p3), 24   ;;  %s648_s10 = smov (!%p175_p3), 16  }
   0xb   : > { %s649_s11 = smov (!%p175_p3), 40   ;;  %s650_s12 = smov (!%p175_p3), 32  }
   0xc   : > { %s651_s13 = smov (!%p175_p3), 8   ;;  %s652_s14 = smov (!%p175_p3), 48  }
   0xd   : > { %p394_p6 = scmp.eq.s32.totalorder (!%p175_p3), %s633_s16, 0  ;;  %p395_p7 = scmp.eq.s32.totalorder (!%p175_p3), %s629_s15, 0 }
   0xe   : > { %s717_s22 = scalar_select %p204_p5, %s633_s16, 1  ;;  %v605_v0 = vld [vmem:[%s782_s1] ss:$0 sm:$0xff]  ;;  %v606_v1 = vld [vmem:[%s782_s1 + $0x1] ss:$0 sm:$0xff]  ;;  %vm373_vm0 = vcmask 1043456  }
   0xf   : > { %v342_v2 = vld [vmem:[%s783_s2 + $0x20] sm:$0xf]  ;;  %v553_v60 = vld [vmem:[%s783_s2 + $0x18] sm:$0xff]  ;;  %v552_v61 = vld [vmem:[%s783_s2 + $0x10] sm:$0xff]  ;;  %vm310_vm1 = vcmask 64512   ;;  %vm313_vm2 = vcmask 130048   ;;  %p396_p8 = pnand %p395_p7, %p394_p6 }
  0x10   : > { %s554_s23 = smul.u32 224, %s717_s22  ;;  %v360_v6 = vunpack.c.l.b16 %v342_v2  ;;  %v551_v62 = vld [vmem:[%s783_s2 + $0x8] sm:$0xff]  ;;  %v550_v63 = vld [vmem:[%s783_s2] sm:$0xff]  ;;  %vm316_vm3 = vcmask 195584   ;;  %vm319_vm4 = vcmask 261120   ;;  %vm322_vm5 = vcmask 326656  }
  0x11   : > { %vm325_vm6 = vcmask 392192   ;;  %vm328_vm7 = vcmask 457728   ;;  %vm331_vm8 = vcmask 523264   ;;  %vm370_vm9 = vcmask 588800   ;;  %p211_p9 = scmp.lt.s32.totalorder %s629_s15, 11  ;;  %s555_s7 = smul.u32 24, %s717_s22 }
  0x12   : > { %s208_s29 = scalar_lea.vmem %s781_s0, %s554_s23  ;;  %v365_v16 = vpack.c.b16 %v360_v6, %v360_v6  ;;  %s653_s23 = smov 64   ;;  %vm392_vm10 = vcmask 60416  }
  0x13   : > { %s220_s30 = scalar_lea.vmem %s208_s29, %s530_s24  ;;  %s654_s24 = smov 56  }
  0x14   : > { %v221_v3 = vld [vmem:[%s220_s30] sm:$0xff]  ;;  %v222_v4 = vld [vmem:[%s220_s30 + $0x8] sm:$0x3f]  ;;  %v223_v5 = vld [vmem:[%s220_s30 + $0x10] sm:$0xff]  ;;  %v375_v23 = vsel %vm373_vm0, %v365_v16, 0  ;;  %s797_s15 = smov (!%p211_p9, %s629_s15), 11 }
  0x15   : > { %v229_v7 = vmul.f32 %v605_v0, %v221_v3  ;;  %v230_v8 = vmul.f32 %v605_v0, %v222_v4  ;;  %v224_v9 = vld [vmem:[%s220_s30 + $0x18] sm:$0x3f]  ;;  %v231_v10 = vmul.f32 %v605_v0, %v223_v5  ;;  %v225_v11 = vld [vmem:[%s220_s30 + $0x20] sm:$0xff]  ;;  %v226_v12 = vld [vmem:[%s220_s30 + $0x28] sm:$0x3f]  ;;  %380 = vmatpush.bf16.msra.mxu0 %v375_v23  ;;  %s528_s8 = sshll.u32 %s797_s15, 1 }
  0x16   : > { %v232_v13 = vmul.f32 %v605_v0, %v224_v9  ;;  %v233_v14 = vmul.f32 %v605_v0, %v225_v11  ;;  %v234_v15 = vmul.f32 %v605_v0, %v226_v12 }
  0x17   : > { %v237_v17 = vadd.f32 %v606_v1, %v229_v7  ;;  %v238_v18 = vadd.f32 %v606_v1, %v230_v8  ;;  %v239_v19 = vadd.f32 %v606_v1, %v231_v10 }
  0x18   : > { %v240_v20 = vadd.f32 %v606_v1, %v232_v13  ;;  %v241_v21 = vadd.f32 %v606_v1, %v233_v14  ;;  %v242_v22 = vadd.f32 %v606_v1, %v234_v15 }
  0x19   : > { %v243_v24 = vmax.f32 %v237_v17, 0.0  ;;  %v244_v25 = vmax.f32 %v238_v18, 0.0  ;;  %v245_v26 = vmax.f32 %v239_v19, 0.0  ;;  %381 = vmatpush.bf16.msra.mxu0 %v553_v60 }
  0x1a   : > { %v246_v27 = vmax.f32 %v240_v20, 0.0  ;;  %v247_v28 = vmax.f32 %v241_v21, 0.0  ;;  %v248_v29 = vmax.f32 %v242_v22, 0.0 }
  0x1b   : > { %v249_v30 = vpack.c.bf16 %v243_v24, %v243_v24  ;;  %v250_v31 = vpack.c.bf16 %v244_v25, %v244_v25  ;;  %v251_v32 = vpack.c.bf16 %v245_v26, %v245_v26 }
  0x1c   : > { %v252_v33 = vpack.c.bf16 %v246_v27, %v246_v27  ;;  %v253_v34 = vpack.c.bf16 %v247_v28, %v247_v28  ;;  %v254_v35 = vpack.c.bf16 %v248_v29, %v248_v29 }
  0x1d   : > { %v257_v36 = vunpack.c.l.b16 %v249_v30  ;;  %v258_v37 = vunpack.c.l.b16 %v250_v31  ;;  %v274_v38 = vunpack.c.l.b16 %v251_v32  ;;  %382 = vmatpush.bf16.msra.mxu0 %v552_v61 }
  0x1e   : > { %v275_v39 = vunpack.c.l.b16 %v252_v33  ;;  %v293_v41 = vunpack.c.l.b16 %v253_v34  ;;  %v294_v42 = vunpack.c.l.b16 %v254_v35 }
  0x1f   : > { %v259_v40 = vpack.c.b16 %v258_v37, %v257_v36 }
  0x20   : > { %v276_v43 = vpack.c.b16 %v275_v39, %v274_v38  ;;  %v295_v50 = vpack.c.b16 %v294_v42, %v293_v41 }
  0x21   : > { %v269_v44 = vrot.slane %v259_v40, 1  ;;  %v263_v45 = vshll.u32 %v259_v40, 16  ;;  %v261_v48 = vshrl.u32 %v259_v40, 16  ;;  %383 = vmatpush.bf16.msra.mxu0 %v551_v62 }
  0x22   : > { %277 = vrot.lane.b32.xlu1 %v276_v43, %s647_s9  ;;  %v280_v46 = vshrl.u32 %v276_v43, 16  ;;  %v282_v47 = vshll.u32 %v276_v43, 16  ;;  %v288_v51 = vrot.slane %v276_v43, 1  ;;  %v301_v55 = vshll.u32 %v295_v50, 16  ;;  %s215_s9 = sadd.s32 %s555_s7, %s528_s8 }
  0x23   : > { %270 = vrot.lane.b32.xlu0 %v269_v44, %s648_s10  ;;  %v265_v49 = vrot.slane %v263_v45, 1  ;;  %v299_v56 = vshrl.u32 %v295_v50, 16  ;;  %v307_v58 = vrot.slane %v295_v50, 1  ;;  %s529_s10 = sshll.u32 %s215_s9, 3 }
  0x24   : > { %v284_v52 = vrot.slane %v282_v47, 1  ;;  %289 = vrot.lane.b32.xlu2 %v288_v51, %s649_s11  ;;  %v303_v57 = vrot.slane %v301_v55, 1 }
  0x25   : > { %v266_v54 = vor.u32 %v265_v49, %v261_v48  ;;  %384 = vmatpush.bf16.msra.mxu0 %v550_v63 }
  0x26   : > { %v285_v53 = vor.u32 %v284_v52, %v280_v46  ;;  %v304_v59 = vor.u32 %v303_v57, %v299_v56 }
  0x2a   : > { %286 = vrot.lane.b32.xlu1 %v285_v53, %s650_s12 }
  0x2b   : > { %267 = vrot.lane.b32.xlu0 %v266_v54, %s651_s13  ;;  %s217_s13 = scalar_lea.vmem %s784_s3, %s529_s10 }
  0x2c   : > { %296 = vrot.lane.b32.xlu2 %v295_v50, %s652_s14 }
  0x32   : > { %308 = vrot.lane.b32.xlu1 %v307_v58, %s653_s23 }
  0x33   : > { %305 = vrot.lane.b32.xlu0 %v304_v59, %s654_s24 }
  0x7e   : > { %v290_v2 = vpop.permute.xlu2 %289 }
  0x86   : > { %v297_v9 = vpop.permute.xlu2 %296 }
  0x94   : > { %v278_v0 = vpop.permute.xlu1 %277 }
  0x95   : > { %v271_v1 = vpop.permute.xlu0 %270 }
  0x9c   : > { %v287_v3 = vpop.permute.xlu1 %286 }
  0x9d   : > { %v268_v4 = vpop.permute.xlu0 %267 }
  0x9e   : > { %v312_v5 = vsel %vm310_vm1, %v259_v40, %v268_v4 }
  0x9f   : > { %v315_v6 = vsel %vm313_vm2, %v312_v5, %v271_v1 }
  0xa0   : > { %v318_v7 = vsel %vm316_vm3, %v315_v6, %v278_v0 }
  0xa1   : > { %v321_v8 = vsel %vm319_vm4, %v318_v7, %v287_v3 }
  0xa2   : > { %v324_v10 = vsel %vm322_vm5, %v321_v8, %v290_v2 }
  0xa3   : > { %v327_v12 = vsel %vm325_vm6, %v324_v10, %v297_v9 }
  0xa4   : > { %v309_v11 = vpop.permute.xlu1 %308 }
  0xa5   : > { %v306_v13 = vpop.permute.xlu0 %305 }
  0xa6   : > { %v330_v14 = vsel %vm328_vm7, %v327_v12, %v306_v13 }
  0xa7   : > { %v333_v15 = vsel %vm331_vm8, %v330_v14, %v309_v11 }
  0xa8   : > { %547 = vmatmul.msk.bf16.vlgmr.msra.gmra.mxu0 %vm370_vm9, %v333_v15 }
 0x125   : > { %v386_v16 = vpop.f32.mrf.mxu0 }
 0x126   : > { %391 = vst.msk [vmem:[%s217_s13] sm:$0xff] %vm310_vm1, %v386_v16 }
 0x12a   : > { %399 = sbr.rel (%p396_p8) target bundleno = 305 (0x131), region = 36 }
 0x12d   : > { %v388_v17 = vpop.f32.mrf.mxu0 }
 0x12e   : > { %393 = vst.msk [vmem:[%s217_s13 + $0x8] sm:$0xf] %vm392_vm10, %v388_v17 }
 0x12f   : > { %vm400_vm11 = vcmask 58368   ;;  %v655_v18 = vmov 0.0  }
 0x130   : > { %401 = vst.msk [vmem:[%s785_s4] sm:$0x3] %vm400_vm11, %v655_v18 }
 0x131 PF: > { %v403_v19 = vsel %vm310_vm1, %v386_v16, 0.0  ;;  %v404_v20 = vsel %vm392_vm10, %v388_v17, 0.0  ;;  %v412_v21 = vmul.f32 %v386_v16, %v386_v16  ;;  %v413_v22 = vmul.f32 %v388_v17, %v388_v17 }
 0x132   : > { %v405_v23 = vadd.f32 %v404_v20, %v403_v19  ;;  %vm423_vm12 = vcmask 1040384   ;;  %vm426_vm13 = vcmask 58368  }
 0x133   : > { %v414_v24 = vsel %vm310_vm1, %v412_v21, 0.0  ;;  %v415_v25 = vsel %vm392_vm10, %v413_v22, 0.0 }
 0x134   : > { %v406_v26 = vrot.slane %v405_v23, 4  ;;  %v416_v27 = vadd.f32 %v415_v25, %v414_v24 }
 0x136   : > { %v407_v28 = vadd.f32 %v406_v26, %v405_v23  ;;  %v417_v29 = vrot.slane %v416_v27, 4 }
 0x137   : > { %v402_v38 = vld [vmem:[%s785_s4] sm:$0x3] }
 0x138   : > { %v408_v30 = vrot.slane %v407_v28, 2  ;;  %v418_v31 = vadd.f32 %v417_v29, %v416_v27 }
 0x13a   : > { %v409_v32 = vadd.f32 %v408_v30, %v407_v28  ;;  %v419_v33 = vrot.slane %v418_v31, 2 }
 0x13c   : > { %v410_v34 = vrot.slane %v409_v32, 1  ;;  %v420_v35 = vadd.f32 %v419_v33, %v418_v31 }
 0x13e   : > { %v411_v36 = vadd.f32 %v410_v34, %v409_v32  ;;  %v421_v37 = vrot.slane %v420_v35, 1 }
 0x140   : > { %v422_v39 = vadd.f32 %v421_v37, %v420_v35 }
 0x142   : > { %v424_v40 = vsel %vm423_vm12, %v411_v36, %v422_v39 }
 0x143   : > { %v425_v41 = vadd.f32 %v424_v40, %v402_v38 }
 0x145   : > { %427 = vst.msk [vmem:[%s785_s4] sm:$0x3] %vm426_vm13, %v425_v41 }
 0x146 PF: > { %s15_s19 = sadd.s32 1, %s645_s19   ;;  %s786_s15 = smov %s637_s17 }
 0x147   : > { %p12_p10 = scmp.ge.s32.totalorder %s15_s19, 26   ;;  %s787_s16 = smov %s641_s18 }
 0x148   : > { %s788_s17 = smov %s791_s20  ;;  %s789_s18 = smov %s795_s21 }
 0x149   :  { %14 = sbr.rel (!%p12_p10) target bundleno = 3 (0x3), region = 75 }

// kernel: across_forward.5
= control target key start
LH: loop header
LB: loop body
LE: loop exit
PB: predicated region body
PF: predicated region fallthrough
CT: control target
= control target key end

     0   :  { %s368_s9 = smov 0   ;;  %s519_s0 = inlined_call_operand.vmem [shape: f32[2,12,12,8], index: 0, kind: input, shape index: {}]   ;;  %s520_s1 = inlined_call_operand.vmem [shape: f32[2,8], index: 1, kind: input, shape index: {}]   ;;  %s521_s2 = inlined_call_operand.vmem [shape: f32[2,12,12,8], index: 2, kind: output, shape index: {}]  }
   0x1 LB: > { %s325_s10 = sadd.s32 4294967295, %s351_s9   ;;  %p329_p0 = scmp.ge.s32.totalorder %s351_s9, 1  ;;  %s351_s9 = sphi %s368_s9, %s12_s9  }
   0x2   : > { %p112_p1 = scmp.lt.s32.totalorder %s351_s9, 3 }
   0x4   : > { %p113_p2 = pnand %p329_p0, %p112_p1 }
   0x5   : > { %p134_p3 = scmp.lt.s32.totalorder (!%p113_p2), %s325_s10, 1 }
   0x6   : > { %116 = sbr.rel (%p113_p2) target bundleno = 46 (0x2e), region = 28 }
   0xb   : > { %s523_s10 = smov (!%p134_p3, %s325_s10), 1  ;;  %v379_v0 = vld [vmem:[%s520_s1] ss:$0 sm:$0xff]  ;;  %v389_v1 = vld [vmem:[%s520_s1 + $0x1] ss:$0 sm:$0xff]  ;;  %vm244_vm0 = vcmask 64512  }
   0xc   : > { %s334_s11 = smul.u32 192, %s523_s10  ;;  %vm246_vm1 = vcmask 60416  }
   0xe   : > { %s384_s16 = scalar_lea.vmem %s519_s0, %s334_s11  ;;  %s413_s21 = scalar_lea.vmem %s521_s2, %s334_s11 }
   0xf   : > { %v144_v2 = vld [vmem:[%s384_s16] sm:$0xff]  ;;  %v145_v3 = vld [vmem:[%s384_s16 + $0x8] sm:$0xf]  ;;  %v146_v4 = vld [vmem:[%s384_s16 + $0x10] sm:$0xff] }
  0x10   : > { %v170_v5 = vmul.f32 %v379_v0, %v144_v2  ;;  %v171_v6 = vmul.f32 %v379_v0, %v145_v3  ;;  %v172_v7 = vmul.f32 %v379_v0, %v146_v4  ;;  %v147_v8 = vld [vmem:[%s384_s16 + $0x18] sm:$0xf]  ;;  %v148_v9 = vld [vmem:[%s384_s16 + $0x20] sm:$0xff]  ;;  %v149_v10 = vld [vmem:[%s384_s16 + $0x28] sm:$0xf] }
  0x11   : > { %v173_v11 = vmul.f32 %v379_v0, %v147_v8  ;;  %v174_v12 = vmul.f32 %v379_v0, %v148_v9  ;;  %v175_v13 = vmul.f32 %v379_v0, %v149_v10  ;;  %v150_v14 = vld [vmem:[%s384_s16 + $0x30] sm:$0xff]  ;;  %v151_v15 = vld [vmem:[%s384_s16 + $0x38] sm:$0xf]  ;;  %v152_v20 = vld [vmem:[%s384_s16 + $0x40] sm:$0xff] }
  0x12   : > { %v196_v16 = vadd.f32 %v389_v1, %v170_v5  ;;  %v197_v17 = vadd.f32 %v389_v1, %v171_v6  ;;  %v198_v18 = vadd.f32 %v389_v1, %v172_v7  ;;  %v176_v19 = vmul.f32 %v379_v0, %v150_v14  ;;  %v153_v25 = vld [vmem:[%s384_s16 + $0x48] sm:$0xf]  ;;  %v154_v26 = vld [vmem:[%s384_s16 + $0x50] sm:$0xff]  ;;  %v155_v27 = vld [vmem:[%s384_s16 + $0x58] sm:$0xf] }
  0x13   : > { %v199_v21 = vadd.f32 %v389_v1, %v173_v11  ;;  %v200_v22 = vadd.f32 %v389_v1, %v174_v12  ;;  %v201_v23 = vadd.f32 %v389_v1, %v175_v13  ;;  %v177_v24 = vmul.f32 %v379_v0, %v151_v15  ;;  %v156_v32 = vld [vmem:[%s384_s16 + $0x60] sm:$0xff]  ;;  %v157_v33 = vld [vmem:[%s384_s16 + $0x68] sm:$0xf]  ;;  %v158_v37 = vld [vmem:[%s384_s16 + $0x70] sm:$0xff] }
  0x14   : > { %v220_v28 = vmax.f32 %v196_v16, 0.0  ;;  %v221_v29 = vmax.f32 %v197_v17, 0.0  ;;  %v222_v30 = vmax.f32 %v198_v18, 0.0  ;;  %v202_v31 = vadd.f32 %v389_v1, %v176_v19  ;;  %v159_v42 = vld [vmem:[%s384_s16 + $0x78] sm:$0xf]  ;;  %v160_v51 = vld [vmem:[%s384_s16 + $0x80] sm:$0xff] }
  0x15   : > { %v223_v34 = vmax.f32 %v199_v21, 0.0  ;;  %v224_v35 = vmax.f32 %v200_v22, 0.0  ;;  %v203_v36 = vadd.f32 %v389_v1, %v177_v24  ;;  %v225_v38 = vmax.f32 %v201_v23, 0.0  ;;  %v161_v55 = vld [vmem:[%s384_s16 + $0x88] sm:$0xf]  ;;  %v162_v56 = vld [vmem:[%s384_s16 + $0x90] sm:$0xff] }
  0x16   : > { %245 = vst.msk [vmem:[%s413_s21] sm:$0xff] %vm244_vm0, %v220_v28  ;;  %v178_v39 = vmul.f32 %v379_v0, %v152_v20  ;;  %v179_v40 = vmul.f32 %v379_v0, %v153_v25  ;;  %v180_v41 = vmul.f32 %v379_v0, %v154_v26  ;;  %v226_v43 = vmax.f32 %v202_v31, 0.0  ;;  %v163_v59 = vld [vmem:[%s384_s16 + $0x98] sm:$0xf]  ;;  %v164_v63 = vld [vmem:[%s384_s16 + $0xa0] sm:$0xff]  ;;  %v166_v10 = vld [vmem:[%s384_s16 + $0xb0] sm:$0xff] }
  0x17   : > { %247 = vst.msk [vmem:[%s413_s21 + $0x8] sm:$0xf] %vm246_vm1, %v221_v29  ;;  %v181_v44 = vmul.f32 %v379_v0, %v155_v27  ;;  %v182_v45 = vmul.f32 %v379_v0, %v156_v32  ;;  %v183_v46 = vmul.f32 %v379_v0, %v157_v33  ;;  %v184_v50 = vmul.f32 %v379_v0, %v158_v37  ;;  %v165_v6 = vld [vmem:[%s384_s16 + $0xa8] sm:$0xf]  ;;  %v167_v14 = vld [vmem:[%s384_s16 + $0xb8] sm:$0xf] }
  0x18   : > { %248 = vst.msk [vmem:[%s413_s21 + $0x10] sm:$0xff] %vm244_vm0, %v222_v30  ;;  %v204_v47 = vadd.f32 %v389_v1, %v178_v39  ;;  %v205_v48 = vadd.f32 %v389_v1, %v179_v40  ;;  %v206_v49 = vadd.f32 %v389_v1, %v180_v41  ;;  %v227_v52 = vmax.f32 %v203_v36, 0.0 }
  0x19   : > { %249 = vst.msk [vmem:[%s413_s21 + $0x18] sm:$0xf] %vm246_vm1, %v223_v34  ;;  %v207_v53 = vadd.f32 %v389_v1, %v181_v44  ;;  %v185_v54 = vmul.f32 %v379_v0, %v159_v42  ;;  %v208_v58 = vadd.f32 %v389_v1, %v182_v45  ;;  %v209_v62 = vadd.f32 %v389_v1, %v183_v46 }
  0x1a   : > { %250 = vst.msk [vmem:[%s413_s21 + $0x20] sm:$0xff] %vm244_vm0, %v224_v35  ;;  %v228_v57 = vmax.f32 %v204_v47, 0.0  ;;  %v229_v60 = vmax.f32 %v205_v48, 0.0  ;;  %v230_v61 = vmax.f32 %v206_v49, 0.0  ;;  %v210_v2 = vadd.f32 %v389_v1, %v184_v50 }
  0x1b   : > { %251 = vst.msk [vmem:[%s413_s21 + $0x28] sm:$0xf] %vm246_vm1, %v225_v38  ;;  %v186_v3 = vmul.f32 %v379_v0, %v160_v51  ;;  %v187_v4 = vmul.f32 %v379_v0, %v161_v55  ;;  %v188_v5 = vmul.f32 %v379_v0, %v162_v56  ;;  %v231_v7 = vmax.f32 %v207_v53, 0.0 }
  0x1c   : > { %252 = vst.msk [vmem:[%s413_s21 + $0x30] sm:$0xff] %vm244_vm0, %v226_v43  ;;  %v211_v8 = vadd.f32 %v389_v1, %v185_v54  ;;  %v189_v9 = vmul.f32 %v379_v0, %v163_v59  ;;  %v232_v11 = vmax.f32 %v208_v58, 0.0  ;;  %v190_v13 = vmul.f32 %v379_v0, %v164_v63 }
  0x1d   : > { %253 = vst.msk [vmem:[%s413_s21 + $0x38] sm:$0xf] %vm246_vm1, %v227_v52  ;;  %v212_v12 = vadd.f32 %v389_v1, %v186_v3  ;;  %v233_v15 = vmax.f32 %v209_v62, 0.0  ;;  %v213_v16 = vadd.f32 %v389_v1, %v187_v4  ;;  %v191_v17 = vmul.f32 %v379_v0, %v165_v6 }
  0x1e   : > { %254 = vst.msk [vmem:[%s413_s21 + $0x40] sm:$0xff] %vm244_vm0, %v228_v57  ;;  %v234_v18 = vmax.f32 %v210_v2, 0.0  ;;  %v214_v19 = vadd.f32 %v389_v1, %v188_v5  ;;  %v192_v20 = vmul.f32 %v379_v0, %v166_v10  ;;  %v235_v21 = vmax.f32 %v211_v8, 0.0 }
  0x1f   : > { %255 = vst.msk [vmem:[%s413_s21 + $0x48] sm:$0xf] %vm246_vm1, %v229_v60  ;;  %v215_v22 = vadd.f32 %v389_v1, %v189_v9  ;;  %v193_v23 = vmul.f32 %v379_v0, %v167_v14  ;;  %v236_v24 = vmax.f32 %v212_v12, 0.0  ;;  %v216_v25 = vadd.f32 %v389_v1, %v190_v13 }
  0x20   : > { %256 = vst.msk [vmem:[%s413_s21 + $0x50] sm:$0xff] %vm244_vm0, %v230_v61  ;;  %v237_v26 = vmax.f32 %v213_v16, 0.0  ;;  %v217_v27 = vadd.f32 %v389_v1, %v191_v17  ;;  %v238_v28 = vmax.f32 %v214_v19, 0.0  ;;  %v218_v0 = vadd.f32 %v389_v1, %v192_v20 }
  0x21   : > { %257 = vst.msk [vmem:[%s413_s21 + $0x58] sm:$0xf] %vm246_vm1, %v231_v7  ;;  %v239_v29 = vmax.f32 %v215_v22, 0.0  ;;  %v219_v30 = vadd.f32 %v389_v1, %v193_v23  ;;  %v240_v31 = vmax.f32 %v216_v25, 0.0 }
  0x22   : > { %258 = vst.msk [vmem:[%s413_s21 + $0x60] sm:$0xff] %vm244_vm0, %v232_v11  ;;  %v241_v32 = vmax.f32 %v217_v27, 0.0  ;;  %v242_v33 = vmax.f32 %v218_v0, 0.0 }
  0x23   : > { %259 = vst.msk [vmem:[%s413_s21 + $0x68] sm:$0xf] %vm246_vm1, %v233_v15  ;;  %v243_v34 = vmax.f32 %v219_v30, 0.0 }
  0x24   : > { %260 = vst.msk [vmem:[%s413_s21 + $0x70] sm:$0xff] %vm244_vm0, %v234_v18 }
  0x25   : > { %261 = vst.msk [vmem:[%s413_s21 + $0x78] sm:$0xf] %vm246_vm1, %v235_v21 }
  0x26   : > { %262 = vst.msk [vmem:[%s413_s21 + $0x80] sm:$0xff] %vm244_vm0, %v236_v24 }
  0x27   : > { %263 = vst.msk [vmem:[%s413_s21 + $0x88] sm:$0xf] %vm246_vm1, %v237_v26 }
  0x28   : > { %264 = vst.msk [vmem:[%s413_s21 + $0x90] sm:$0xff] %vm244_vm0, %v238_v28 }
  0x29   : > { %265 = vst.msk [vmem:[%s413_s21 + $0x98] sm:$0xf] %vm246_vm1, %v239_v29 }
  0x2a   : > { %266 = vst.msk [vmem:[%s413_s21 + $0xa0] sm:$0xff] %vm244_vm0, %v240_v31 }
  0x2b   : > { %267 = vst.msk [vmem:[%s413_s21 + $0xa8] sm:$0xf] %vm246_vm1, %v241_v32 }
  0x2c   : > { %268 = vst.msk [vmem:[%s413_s21 + $0xb0] sm:$0xff] %vm244_vm0, %v242_v33 }
  0x2d   : > { %269 = vst.msk [vmem:[%s413_s21 + $0xb8] sm:$0xf] %vm246_vm1, %v243_v34 }
  0x2e PF: > { %s12_s9 = sadd.s32 1, %s351_s9  }
  0x2f   : > { %p9_p4 = scmp.ge.s32.totalorder %s12_s9, 4  }
  0x31   :  { %11 = sbr.rel (!%p9_p4) target bundleno = 1 (0x1), region = 58 }

</bundles_post_ra>
